<compile_context>
chip_gen: v7x
topology: tpu7x:2x2x1
jax: 0.10.0
libtpu: 0.0.40
codegen_flags: <defaults>
</compile_context>

<pallas_src>
import functools

import jax
import jax.numpy as jnp
from jax.experimental import pallas as pl
from jax.experimental.pallas import tpu as pltpu


_LANE = 128


def _round_up(a, b):
    return (a + b - 1) // b * b


def _sublane_align(dtype):
    # Minimum sublane granularity for a dtype: 8 rows for 4-byte, 16 for
    # 2-byte, 32 for 1-byte (sub-32-bit types pack along sublanes).
    return max(8, 32 // jnp.dtype(dtype).itemsize)


def _largest_aligned_divisor_tile(total, align, budget):
    """Largest t with t % align == 0, t divides total, t <= max(budget, align)."""
    assert total % align == 0
    units = total // align
    budget_units = max(1, budget // align)
    if units <= budget_units:
        return total
    best = 1
    d = 1
    while d * d <= units:
        if units % d == 0:
            lo, hi = d, units // d
            if hi <= budget_units:
                best = max(best, hi)
            if lo <= budget_units:
                best = max(best, lo)
        d += 1
    return best * align


def _tpu_vmem_capacity_bytes():
    try:
        info = pltpu.get_tpu_info()
        return int(getattr(info, "vmem_capacity_bytes", 128 << 20))
    except Exception:
        return 128 << 20


# ----------------------------------------------------------------------------
# Parameter setup (glue; mirrors compute_shift_scale from the PyTorch file).
# ----------------------------------------------------------------------------
def compute_shift_scale(x, num_bits_shift=8, num_bits_scale=8):
    x_abs = jnp.abs(x)
    x_sign = jnp.sign(x)
    u_p = 2 ** num_bits_scale - 1
    power_of_2 = jnp.floor(jnp.log2(u_p / x_abs))
    shift = jnp.clip(power_of_2, 0.0, float(2 ** num_bits_shift - 1))
    scale = x_abs * jnp.power(2.0, shift)
    mask = jnp.isnan(scale)
    scale = jnp.where(mask, 0.0, scale)
    shift = jnp.where(mask, 1.0, shift)
    scale = x_sign * jnp.round(scale)
    return shift, scale


# ----------------------------------------------------------------------------
# Pallas kernel: the elementwise hot path.
# ----------------------------------------------------------------------------
def _oss_kernel(x_ref, off_ref, scl_ref, shf_ref, o_ref, *, c_n, c_p, use_floor):
    # x_ref/o_ref: (row_tile, col_tile); off/scl/shf: (row_tile, 1) per-row
    # parameters (lane-broadcast on the VPU).  Exact PyTorch op order.
    y = (x_ref[...] + off_ref[...]) * scl_ref[...]
    y = y * shf_ref[...]
    y = jnp.floor(y) if use_floor else jnp.round(y)
    y = jnp.clip(y, c_n, c_p)
    # Cast is exact when o_ref is integer: y is integer-valued and already
    # clamped to [c_n, c_p] (the wrapper only allows int dtypes that fit).
    o_ref[...] = y.astype(o_ref.dtype)


# ----------------------------------------------------------------------------
# Wrapper: tiling selection + layout plumbing + pallas_call.
# ----------------------------------------------------------------------------
def tinpu_offset_scale_shift(x, offset, scale, shift, c_n, c_p,
                             use_floor=True, out_dtype=None):
    """x: (N, C, H, W) float; offset/scale/shift: (C,) float.

    out_dtype=None keeps the input dtype (PyTorch-identical).  Passing an
    integer dtype (e.g. jnp.int8 for clip range [-128, 127]) cuts writeback
    bytes 4x with bit-identical values; ignored if the clip range doesn't fit.
    """
    N, C, H, W = x.shape
    dtype = x.dtype
    itemsize = jnp.dtype(dtype).itemsize
    R, HW = N * C, H * W

    # ---- output dtype --------------------------------------------------------
    if out_dtype is None:
        out_dtype = dtype
    out_dtype = jnp.dtype(out_dtype)
    if jnp.issubdtype(out_dtype, jnp.integer):
        ii = jnp.iinfo(out_dtype)
        if not (ii.min <= c_n and c_p <= ii.max):
            out_dtype = jnp.dtype(dtype)   # keep values exact for odd clip ranges
    out_itemsize = out_dtype.itemsize

    # ---- per-generation sizing -----------------------------------------------
    vmem_cap = _tpu_vmem_capacity_bytes()
    # v7x: 64 MiB VMEM per TensorCore -> 4 MiB blocks; v5e/v6e: 128 MiB -> 6 MiB.
    target_block_bytes = (4 << 20) if vmem_cap <= (64 << 20) else (6 << 20)

    a_in = _sublane_align(dtype)
    a_out = _sublane_align(out_dtype)
    align = max(a_in, a_out)

    # ---- column (lane) tiling: prefer full-width, fully-contiguous blocks ----
    min_rows = align if R % align == 0 else R
    if HW % _LANE == 0 and HW * min_rows * itemsize > target_block_bytes:
        col_budget = max(_LANE, target_block_bytes // (min_rows * itemsize))
        col_tile = _largest_aligned_divisor_tile(HW, _LANE, col_budget)
    else:
        # Block spans the full last dim (allowed even when HW % 128 != 0; the
        # tail lanes just become masked stores -- accepted waste per review).
        col_tile = HW

    # ---- row (sublane) tiling -------------------------------------------------
    if R % align == 0:
        row_budget = max(align, target_block_bytes // (col_tile * itemsize))
        row_budget = min(row_budget, 2048)   # bounds lane-padded param VMEM
        row_tile = _largest_aligned_divisor_tile(R, align, row_budget)
    else:
        # Ragged N*C: one full-height row block (block dim == full array dim).
        # TODO(synk): for very large ragged N*C consider a separate tail block
        # instead of a single tall block.
        row_tile = R

    # Give both v7x TensorCores work when a mid-size tensor would otherwise be
    # a single block (harmless on v5e/v6e).
    total_bytes = R * HW * itemsize
    if ((R // row_tile) * (HW // col_tile) == 1 and total_bytes > (2 << 20)
            and R % (2 * align) == 0):
        row_tile = R // 2

    grid = (R // row_tile, HW // col_tile)

    # ---- VMEM budget / scoped limit -------------------------------------------
    def _vmem_block(rows, cols, isz, al):
        return _round_up(rows, al) * _round_up(cols, _LANE) * isz

    in_blk = _vmem_block(row_tile, col_tile, itemsize, a_in)
    out_blk = _vmem_block(row_tile, col_tile, out_itemsize, a_out)
    par_blk = _vmem_block(row_tile, 1, itemsize, a_in)
    needed = 2 * (in_blk + out_blk + 3 * par_blk) + (2 << 20)
    vmem_limit = int(min(max(32 << 20, needed * 5 // 4), int(vmem_cap * 0.85)))

    # ---- layout plumbing (reshapes are free; no pad/slice HBM passes) ---------
    x2 = x.reshape(R, HW)
    params = [
        jnp.broadcast_to(p.reshape(1, C).astype(dtype), (N, C)).reshape(R, 1)
        for p in (offset, scale, shift)
    ]

    kernel = functools.partial(_oss_kernel, c_n=float(c_n), c_p=float(c_p),
                               use_floor=use_floor)
    x_spec = pl.BlockSpec((row_tile, col_tile), lambda i, j: (i, j))
    # Param block index only depends on i -> Pallas skips the re-DMA while the
    # row block is unchanged (columns iterate fastest).
    p_spec = pl.BlockSpec((row_tile, 1), lambda i, j: (i, 0))

    out2 = pl.pallas_call(
        kernel,
        out_shape=jax.ShapeDtypeStruct((R, HW), out_dtype),
        grid_spec=pltpu.PrefetchScalarGridSpec(
            num_scalar_prefetch=0,
            grid=grid,
            in_specs=[x_spec, p_spec, p_spec, p_spec],
            out_specs=pl.BlockSpec((row_tile, col_tile), lambda i, j: (i, j)),
        ),
        compiler_params=pltpu.CompilerParams(
            dimension_semantics=("parallel", "parallel"),
            vmem_limit_bytes=vmem_limit),
    )(x2, *params)

    return out2.reshape(N, C, H, W)


# ----------------------------------------------------------------------------
# Pure-JAX reference (for correctness check; same op order -> bit-exact).
# ----------------------------------------------------------------------------
def reference(x, offset, scale, shift, c_n, c_p, use_floor=True):
    y = (x + offset.reshape(1, -1, 1, 1)) * scale.reshape(1, -1, 1, 1)
    y = y * shift.reshape(1, -1, 1, 1)
    y = jnp.floor(y) if use_floor else jnp.round(y)
    return jnp.clip(y, c_n, c_p)


if __name__ == "__main__":
    key = jax.random.PRNGKey(0)
    k_w, k_b, k_x1, k_x2 = jax.random.split(key, 4)
    c_n, c_p = -128, 127

    def run_case(k_inp, N, C, H, W, use_floor, out_dtype=None):
        combined_weight = jax.random.uniform(k_w, (C,), jnp.float32, 0.05, 2.0)
        shift_buf, scale_buf = compute_shift_scale(combined_weight)
        offset_buf = jax.random.normal(k_b, (C,), jnp.float32) * 4.0
        x = jax.random.normal(k_inp, (N, C, H, W), jnp.float32) * 10.0

        out = tinpu_offset_scale_shift(x, offset_buf, scale_buf, shift_buf,
                                       c_n, c_p, use_floor=use_floor,
                                       out_dtype=out_dtype)
        out = jax.block_until_ready(out)

        ref = reference(x, offset_buf, scale_buf, shift_buf, c_n, c_p, use_floor)
        expect_dtype = jnp.dtype(out_dtype) if out_dtype is not None else x.dtype
        if jnp.issubdtype(expect_dtype, jnp.integer):
            ref = ref.astype(expect_dtype)
        assert out.shape == (N, C, H, W)
        assert out.dtype == expect_dtype
        # Exact equality: the op is supposed to be bit-exact vs the reference.
        assert bool(jnp.all(out == ref)), "Pallas kernel mismatch vs reference"

    # Lane/sublane-aligned case (16x16 feature map, N*C = 8).
    run_case(k_x1, 2, 4, 16, 16, use_floor=True)
    # Ragged case (7x7 map, N*C = 6): full-dim blocks, no padding HBM passes.
    run_case(k_x2, 2, 3, 7, 7, use_floor=False)
    # int8 writeback path (exact for clip range [-128, 127]).
    run_case(k_x1, 2, 4, 16, 16, use_floor=True, out_dtype=jnp.int8)

    print("KERNEL_OK")
</pallas_src>

<mosaic_0001>
module attributes {stable_mosaic.version = 11 : i64} {
  func.func @_oss_kernel(%arg0: i32, %arg1: i32, %arg2: memref<8x256xf32, #tpu.memory_space<vmem>>, %arg3: memref<8x1xf32, #tpu.memory_space<vmem>>, %arg4: memref<8x1xf32, #tpu.memory_space<vmem>>, %arg5: memref<8x1xf32, #tpu.memory_space<vmem>>, %arg6: memref<8x256xf32, #tpu.memory_space<vmem>>) attributes {dimension_semantics = [#tpu.dimension_semantics<parallel>, #tpu.dimension_semantics<parallel>], iteration_bounds = array<i64: 1, 1>, scalar_prefetch = 0 : i64, scratch_operands = 0 : i64, tpu.core_type = #tpu.core_type<tc>, window_params = [{transform_indices = @transform_0, window_bounds = array<i64: 8, 256>}, {transform_indices = @transform_1, window_bounds = array<i64: 8, 1>}, {transform_indices = @transform_2, window_bounds = array<i64: 8, 1>}, {transform_indices = @transform_3, window_bounds = array<i64: 8, 1>}, {transform_indices = @transform_4, window_bounds = array<i64: 8, 256>}]} {
    %c0 = arith.constant 0 : index
    %c0_0 = arith.constant 0 : index
    %0 = vector.load %arg2[%c0, %c0_0] : memref<8x256xf32, #tpu.memory_space<vmem>>, vector<8x256xf32>
    %c0_1 = arith.constant 0 : index
    %c0_2 = arith.constant 0 : index
    %1 = vector.load %arg3[%c0_1, %c0_2] : memref<8x1xf32, #tpu.memory_space<vmem>>, vector<8x1xf32>
    %2 = vector.broadcast %1 : vector<8x1xf32> to vector<8x256xf32>
    %3 = arith.addf %0, %2 : vector<8x256xf32>
    %c0_3 = arith.constant 0 : index
    %c0_4 = arith.constant 0 : index
    %4 = vector.load %arg4[%c0_3, %c0_4] : memref<8x1xf32, #tpu.memory_space<vmem>>, vector<8x1xf32>
    %5 = vector.broadcast %4 : vector<8x1xf32> to vector<8x256xf32>
    %6 = arith.mulf %3, %5 : vector<8x256xf32>
    %c0_5 = arith.constant 0 : index
    %c0_6 = arith.constant 0 : index
    %7 = vector.load %arg5[%c0_5, %c0_6] : memref<8x1xf32, #tpu.memory_space<vmem>>, vector<8x1xf32>
    %8 = vector.broadcast %7 : vector<8x1xf32> to vector<8x256xf32>
    %9 = arith.mulf %6, %8 : vector<8x256xf32>
    %10 = math.floor %9 : vector<8x256xf32>
    %cst = arith.constant -1.280000e+02 : f32
    %cst_7 = arith.constant 1.270000e+02 : f32
    %11 = vector.broadcast %cst : f32 to vector<8x256xf32>
    %12 = arith.maximumf %11, %10 : vector<8x256xf32>
    %13 = vector.broadcast %cst_7 : f32 to vector<8x256xf32>
    %14 = arith.minimumf %13, %12 : vector<8x256xf32>
    %c0_8 = arith.constant 0 : index
    %c0_9 = arith.constant 0 : index
    %15 = vector.load %arg6[%c0_8, %c0_9] : memref<8x256xf32, #tpu.memory_space<vmem>>, vector<8x256xf32>
    tpu.vector_store %arg6[%c0_8, %c0_9], %14 {strides = array<i32>} : memref<8x256xf32, #tpu.memory_space<vmem>>, vector<8x256xf32>,
    return
  }
  func.func @transform_0(%arg0: i32, %arg1: i32) -> (i32, i32) {
    %c0_i32 = arith.constant 0 : i32
    return %arg0, %arg1 : i32, i32
  }
  func.func @transform_1(%arg0: i32, %arg1: i32) -> (i32, i32) {
    %c0_i32 = arith.constant 0 : i32
    %c0_i32_0 = arith.constant 0 : i32
    return %arg0, %c0_i32 : i32, i32
  }
  func.func @transform_2(%arg0: i32, %arg1: i32) -> (i32, i32) {
    %c0_i32 = arith.constant 0 : i32
    %c0_i32_0 = arith.constant 0 : i32
    return %arg0, %c0_i32 : i32, i32
  }
  func.func @transform_3(%arg0: i32, %arg1: i32) -> (i32, i32) {
    %c0_i32 = arith.constant 0 : i32
    %c0_i32_0 = arith.constant 0 : i32
    return %arg0, %c0_i32 : i32, i32
  }
  func.func @transform_4(%arg0: i32, %arg1: i32) -> (i32, i32) {
    %c0_i32 = arith.constant 0 : i32
    return %arg0, %arg1 : i32, i32
  }
}

</mosaic_0001>

<bundles_post_ra>
// kernel: tpu_custom_call.1
= control target key start
LH: loop header
LB: loop body
LE: loop exit
PB: predicated region body
PF: predicated region fallthrough
CT: control target
= control target key end

     0   :  { %v94_v2 = vmov 0   ;;  %s148_s0 = inlined_call_operand.vmem [shape: f32[8,256], index: 0, kind: input, shape index: {}]   ;;  %s149_s1 = inlined_call_operand.vmem [shape: f32[8,1], index: 1, kind: input, shape index: {}]   ;;  %s150_s2 = inlined_call_operand.vmem [shape: f32[8,1], index: 2, kind: input, shape index: {}]   ;;  %s151_s3 = inlined_call_operand.vmem [shape: f32[8,1], index: 3, kind: input, shape index: {}]   ;;  %s152_s4 = inlined_call_operand.hbm [shape: f32[8,256], index: 4, kind: output, shape index: {}]  }
   0x1   :  { %v20_v0 = vld [vmem:[%s149_s1] sm:$0xff]  ;;  %68 = vset.pattern.permute.xlu0 %v94_v2  ;;  %69 = vset.pattern.permute.xlu1 %v94_v2 }
   0x2   :  { %v36_v1 = vld [vmem:[%s151_s3] sm:$0xff] }
   0x3   :  { %9 = vsyncpa [#allocation3], 0  ;;  %23 = vperm.xlu0 %68, %v20_v0   ;;  %39 = vperm.xlu1 %69, %v36_v1   ;;  %v28_v3 = vld [vmem:[%s150_s2] sm:$0xff]  ;;  %v19_v6 = vld [vmem:[%s148_s0 + $0x8] sm:$0xff]  ;;  %s95_s2 = smov [#allocation2]  }
   0x4   :  { %v18_v5 = vld [vmem:[%s148_s0] sm:$0xff]  ;;  %s58_s3 = sshll.u32 %s95_s2, 4  ;;  %s59_s3 = int_to_ptr.vmem [resolvable:$true] %s58_s3 }
   0x5   :  { %s70_s0 = scalar_lea.vmem %s59_s3, 256  ;;  %p75_p1 = scmp.lt.s32.totalorder %s59_s3, %s59_s3 }
   0x6   :  { %p71_p0 = scmp.ne.s32.totalorder %s59_s3, %s70_s0  ;;  %p76_p2 = scmp.lt.s32.totalorder %s70_s0, %s70_s0 }
   0x7   :  { %31 = vperm.xlu0 %68, %v28_v3  }
   0x8   :  { %p77_p3 = por %p76_p2, %p75_p1 }
   0xa   :  { %p78_p4 = pnand %p77_p3, %p71_p0 }
  0x82   :  { %v24_v4 = vpop.permute.xlu0 %23  ;;  %v40_v10 = vpop.permute.xlu1 %39 }
  0x83   :  { %v26_v7 = vadd.f32 %v24_v4, %v18_v5  ;;  %v27_v8 = vadd.f32 %v24_v4, %v19_v6 }
  0x86   :  { %v32_v9 = vpop.permute.xlu0 %31 }
  0x87   :  { %v34_v11 = vmul.f32 %v32_v9, %v26_v7  ;;  %v35_v12 = vmul.f32 %v32_v9, %v27_v8 }
  0x89   :  { %v42_v13 = vmul.f32 %v40_v10, %v34_v11  ;;  %v43_v14 = vmul.f32 %v40_v10, %v35_v12 }
  0x8b   :  { %v44_v15 = vfloor.f32 %v42_v13  ;;  %v45_v16 = vfloor.f32 %v43_v14 }
  0x8d   :  { %v46_v17 = vmax.f32 %v44_v15, -128.0  ;;  %v47_v18 = vmax.f32 %v45_v16, -128.0 }
  0x8f   :  { %v48_v19 = vmin.f32 %v46_v17, 127.0  ;;  %v49_v20 = vmin.f32 %v47_v18, 127.0 }
  0x91   :  { %50 = vst [vmem:[#allocation2] sm:$0xff] %v48_v19  ;;  %51 = vst [vmem:[#allocation2 + $0x8] sm:$0xff] %v49_v20 }
  0x92   :  { %81 = shalt.err (!%p78_p4)
}
  0x93   :  { %s82_s26 = scalar_lea.hbm %s152_s4, 256 }
  0x94   :  { %p83_p5 = scmp.ne.s32.totalorder %s152_s4, %s82_s26  ;;  %p86_p6 = scmp.lt.u32.totalorder %s82_s26, %s152_s4 }
  0x96   :  { %p88_p7 = pnand %p86_p6, %p83_p5 }
  0x98   :  { %91 = shalt.err (!%p88_p7)
}
  0x99   :  { %61 = dma.vmem_to_hbm [thread:$0]  %s59_s3, 256, %s152_s4, [#allocation3]  }
  0x9a   :  { %92 = dma.done.wait [#allocation3], 256  }
  0x9b   :  { %93 = vsyncadd [#allocation3], 4294967040 }
  0x9c   :  { %65 = vsyncpa [#allocation3], 1 }

</bundles_post_ra>
